<compile_context>
chip_gen: v5e
topology: v5e:2x2
jax: 0.10.0
libtpu: 0.0.40
codegen_flags: <defaults>
</compile_context>

<pallas_src>
import functools

import jax
import jax.numpy as jnp
from jax.experimental import pallas as pl
from jax.experimental.pallas import tpu as pltpu


# ----------------------------- kernels -----------------------------

def _spatial_chunk_kernel(x_ref, w_ref, b_ref, out_ref, acc_ref, *, inv_hw):
    """Path A. Grid: (batch tiles, spatial chunks); reduction over spatial chunks.
       x_ref:   [tb, C, thw]  feature tile (spatial chunk on the 128-lane axis)
       w_ref:   [C, n_pad]    weight (original dtype, class-padded), grid-invariant
       b_ref:   [1, n_pad]    bias (class-padded), grid-invariant
       out_ref: [tb, n_pad]   logits tile (resident across the spatial grid axis)
       acc_ref: [tb, C]       f32 running spatial-sum accumulator
    """
    k = pl.program_id(1)

    @pl.when(k == 0)
    def _init():
        acc_ref[...] = jnp.zeros_like(acc_ref)

    # Partial sum over this spatial chunk (cross-lane reduce, hidden under DMA).
    acc_ref[...] += jnp.sum(x_ref[...].astype(jnp.float32), axis=-1)

    @pl.when(k == pl.num_programs(1) - 1)
    def _finalize():
        pooled = (acc_ref[...] * inv_hw).astype(w_ref.dtype)   # mean, MXU-native dtype
        logits = jnp.dot(pooled, w_ref[...], preferred_element_type=jnp.float32)
        out_ref[...] = (logits + b_ref[...].astype(jnp.float32)).astype(out_ref.dtype)


def _channel_chunk_kernel(x_ref, w_ref, b_ref, out_ref, acc_ref, *, inv_hw):
    """Path B (small spatial, e.g. 7x7). Grid: (batch tiles, channel chunks).
       x_ref:   [tb, tc, HW]  feature tile (full spatial extent, chunk of channels)
       w_ref:   [tc, n_pad]   matching weight chunk
       b_ref:   [1, n_pad]
       out_ref: [tb, n_pad]
       acc_ref: [tb, n_pad]   f32 partial-logits accumulator
    """
    k = pl.program_id(1)

    @pl.when(k == 0)
    def _init():
        acc_ref[...] = jnp.zeros_like(acc_ref)

    pooled = jnp.sum(x_ref[...].astype(jnp.float32), axis=-1)          # [tb, tc]
    acc_ref[...] += jnp.dot(pooled.astype(w_ref.dtype), w_ref[...],
                            preferred_element_type=jnp.float32)

    @pl.when(k == pl.num_programs(1) - 1)
    def _finalize():
        out_ref[...] = (acc_ref[...] * inv_hw
                        + b_ref[...].astype(jnp.float32)).astype(out_ref.dtype)


# -------------------------- tile selection --------------------------

def _vmem_capacity_bytes():
    """Per-core VMEM capacity; conservative v7x value if the query is unavailable."""
    try:
        return int(pltpu.get_tpu_info().vmem_capacity_bytes)
    except Exception:
        return 64 * 1024 * 1024


def _pick_batch_tile(batch, tb_cap):
    """Largest output-legal batch tile (multiple of 8 dividing `batch`, or the full
    batch) <= tb_cap, kept <= batch/2 when batch >= 16 so the parallel grid axis has
    at least two programs (both v7x TensorCores busy)."""
    tb_cap = max(1, int(tb_cap))
    if batch >= 16:
        tb_cap = min(tb_cap, batch // 2)
    if batch <= 8 or batch % 8 != 0:
        # Only the full extent is a legal (8,128)-tiled output block here.
        return batch
    best = 8
    for t in range(8, batch + 1, 8):
        if batch % t == 0 and t <= tb_cap:
            best = t
    return best


# ----------------------------- wrapper ------------------------------

def base_head_forward(features_nchw, weight, bias):
    """features_nchw: [B, C, H, W] backbone feature map (dtype preserved; bf16 ok)
       weight:        [C, num_classes]  (dtype preserved; bf16 feeds the MXU natively)
       bias:          [num_classes]
       returns logits [B, num_classes]  (float32)
    """
    B, C, H, W = features_nchw.shape
    HW = H * W
    num_classes = weight.shape[1]
    n_pad = ((num_classes + 127) // 128) * 128
    inv_hw = 1.0 / float(HW)

    # Free contiguous reshape of the NCHW map (no transpose pass through HBM).
    x = features_nchw.reshape(B, C, HW)

    # Keep weight/bias in their given dtype; the 1/(H*W) mean scale is applied to the
    # f32 accumulator at finalize instead of being folded into a low-precision weight.
    w_pad = jnp.pad(weight, ((0, 0), (0, n_pad - num_classes)))
    b_pad = jnp.pad(bias, (0, n_pad - num_classes)).reshape(1, n_pad)

    x_bytes = x.dtype.itemsize
    w_bytes = w_pad.dtype.itemsize
    b_bytes = b_pad.dtype.itemsize

    # Generation-aware VMEM budget (v7x: 64 MiB/TC, v5e/v6e: 128 MiB).
    capacity = _vmem_capacity_bytes()
    vmem_limit = int(capacity * 0.8)
    budget = int(vmem_limit * 0.65)                    # headroom for compiler scratch
    big_vmem = capacity >= 96 * 1024 * 1024
    feat_bufs = 3 if big_vmem else 2                   # deeper pipeline on 128 MiB parts

    spatial_path = (HW % 128 == 0) and (HW >= 256)

    if spatial_path:
        # ---- Path A: stream lane-aligned spatial chunks, pooled-sum accumulator. ----
        thw_target = 1024 if big_vmem else 512
        thw_candidates = sorted(
            [d for d in range(128, HW + 1, 128) if HW % d == 0 and d <= thw_target],
            reverse=True)
        fixed = C * n_pad * w_bytes + n_pad * b_bytes          # single-buffered invariants
        tb = thw = None
        for cand in thw_candidates:
            per_tb = feat_bufs * C * cand * x_bytes + 2 * n_pad * 4 + C * 4
            cap_tb = max(1, (budget - fixed) // per_tb)
            tb, thw = _pick_batch_tile(B, cap_tb), cand
            if fixed + tb * per_tb <= budget:
                break
        kernel = functools.partial(_spatial_chunk_kernel, inv_hw=inv_hw)
        grid = (B // tb, HW // thw)
        feat_block, feat_map = (tb, C, thw), (lambda i, k: (i, 0, k))
        w_block, w_map = (C, n_pad), (lambda i, k: (0, 0))
        w_mode = pl.Buffered(1)                        # grid-invariant: second buffer is waste
        scratch = pltpu.VMEM((tb, C), jnp.float32)     # f32 pooled-sum accumulator
    else:
        # ---- Path B: small spatial (7x7-style heads) — stream channel chunks and
        #      accumulate partial logits so the reduction pipeline keeps real depth. ----
        if C % 8 == 0 and C >= 16:
            tc_candidates = sorted(
                [d for d in range(8, C // 2 + 1, 8) if C % d == 0 and d <= 512],
                reverse=True)
        else:
            tc_candidates = [C]
        tb = tc = None
        for cand in tc_candidates:
            per_tb = feat_bufs * cand * HW * x_bytes + 2 * n_pad * 4 + n_pad * 4
            fixed = 2 * cand * n_pad * w_bytes + n_pad * b_bytes  # weight chunk double-buffered
            cap_tb = max(1, (budget - fixed) // per_tb)
            tb, tc = _pick_batch_tile(B, cap_tb), cand
            if fixed + tb * per_tb <= budget:
                break
        kernel = functools.partial(_channel_chunk_kernel, inv_hw=inv_hw)
        grid = (B // tb, C // tc)
        feat_block, feat_map = (tb, tc, HW), (lambda i, k: (i, k, 0))
        w_block, w_map = (tc, n_pad), (lambda i, k: (k, 0))
        w_mode = pl.Buffered(2)                        # weight chunk changes every step
        scratch = pltpu.VMEM((tb, n_pad), jnp.float32)  # f32 partial-logits accumulator

    def _call(feat_mode, weight_mode, bias_mode):
        return pl.pallas_call(
            kernel,
            out_shape=jax.ShapeDtypeStruct((B, n_pad), jnp.float32),
            grid_spec=pltpu.PrefetchScalarGridSpec(
                num_scalar_prefetch=0,
                grid=grid,
                in_specs=[
                    pl.BlockSpec(feat_block, feat_map, pipeline_mode=feat_mode),
                    pl.BlockSpec(w_block, w_map, pipeline_mode=weight_mode),
                    pl.BlockSpec((1, n_pad), lambda i, k: (0, 0), pipeline_mode=bias_mode),
                ],
                out_specs=pl.BlockSpec((tb, n_pad), lambda i, k: (i, 0)),
                scratch_shapes=[scratch],
            ),
            compiler_params=pltpu.CompilerParams(
                dimension_semantics=("parallel", "arbitrary"),
                vmem_limit_bytes=vmem_limit,
            ),
        )(x, w_pad, b_pad)

    try:
        out = _call(pl.Buffered(feat_bufs), w_mode, pl.Buffered(1))
    except Exception:
        # TODO(synk): fall back to default double-buffering if this jax build rejects
        #             pipeline_mode / single-buffered invariant operands.
        out = _call(None, None, None)

    return out[:, :num_classes]


if __name__ == "__main__":
    config = {"in_channels": 4, "num_classes": 8}
    num_classes = config["num_classes"]

    key = jax.random.PRNGKey(0)
    k1, k2, k3, k4, k5 = jax.random.split(key, 5)

    # Case 1: spatial-chunked path (HW = 48*48 = 2304 -> multiple 128-aligned chunks).
    B, C, H, W = 2, config["in_channels"], 48, 48
    feats = jax.random.normal(k1, (B, C, H, W), dtype=jnp.float32)
    wgt = jax.random.normal(k2, (C, num_classes), dtype=jnp.float32) * 0.05
    bs = jax.random.normal(k3, (num_classes,), dtype=jnp.float32) * 0.01
    logits = base_head_forward(feats, wgt, bs)
    jax.block_until_ready(logits)
    ref = jnp.mean(feats, axis=(2, 3)) @ wgt + bs
    assert logits.shape == (B, num_classes)
    assert jnp.allclose(logits, ref, atol=1e-5, rtol=1e-5)

    # Case 2: channel-chunked path (7x7 classifier-style head -> C-chunk reduction).
    B2, C2, H2, W2 = 2, 16, 7, 7
    feats2 = jax.random.normal(k4, (B2, C2, H2, W2), dtype=jnp.float32)
    wgt2 = jax.random.normal(k5, (C2, num_classes), dtype=jnp.float32) * 0.05
    logits2 = base_head_forward(feats2, wgt2, bs)
    jax.block_until_ready(logits2)
    ref2 = jnp.mean(feats2, axis=(2, 3)) @ wgt2 + bs
    assert logits2.shape == (B2, num_classes)
    assert jnp.allclose(logits2, ref2, atol=1e-5, rtol=1e-5)

    print("KERNEL_OK")
</pallas_src>

<mosaic_0001>
module attributes {stable_mosaic.version = 11 : i64} {
  func.func @_spatial_chunk_kernel(%arg0: i32, %arg1: i32, %arg2: memref<2x4x384xf32, #tpu.memory_space<vmem>>, %arg3: memref<4x128xf32, #tpu.memory_space<vmem>>, %arg4: memref<1x128xf32, #tpu.memory_space<vmem>>, %arg5: memref<2x128xf32, #tpu.memory_space<vmem>>, %arg6: memref<2x4xf32, #tpu.memory_space<vmem>>) attributes {dimension_semantics = [#tpu.dimension_semantics<parallel>, #tpu.dimension_semantics<arbitrary>], iteration_bounds = array<i64: 1, 6>, scalar_prefetch = 0 : i64, scratch_operands = 1 : i64, tpu.core_type = #tpu.core_type<tc>, window_params = [{pipeline_mode = #tpu.pipeline_mode<double_buffered>, transform_indices = @transform_0, window_bounds = array<i64: 2, 4, 384>}, {pipeline_mode = #tpu.pipeline_mode<synchronous>, transform_indices = @transform_1, window_bounds = array<i64: 4, 128>}, {pipeline_mode = #tpu.pipeline_mode<synchronous>, transform_indices = @transform_2, window_bounds = array<i64: 1, 128>}, {transform_indices = @transform_3, window_bounds = array<i64: 2, 128>}]} {
    %c0_i32 = arith.constant 0 : i32
    %0 = arith.cmpi eq, %arg1, %c0_i32 : i32
    %1 = arith.extui %0 : i1 to i32
    %c0_i32_0 = arith.constant 0 : i32
    %2 = arith.cmpi ne, %1, %c0_i32_0 : i32
    scf.if %2 {
      %cst_8 = arith.constant 0.000000e+00 : f32
      %11 = vector.broadcast %cst_8 : f32 to vector<2x4xf32>
      %c0_9 = arith.constant 0 : index
      %c0_10 = arith.constant 0 : index
      %12 = vector.load %arg6[%c0_9, %c0_10] : memref<2x4xf32, #tpu.memory_space<vmem>>, vector<2x4xf32>
      tpu.vector_store %arg6[%c0_9, %c0_10], %11 {strides = array<i32>} : memref<2x4xf32, #tpu.memory_space<vmem>>, vector<2x4xf32>,
    } else {
    }
    %c0 = arith.constant 0 : index
    %c0_1 = arith.constant 0 : index
    %3 = vector.load %arg6[%c0, %c0_1] : memref<2x4xf32, #tpu.memory_space<vmem>>, vector<2x4xf32>
    %c0_2 = arith.constant 0 : index
    %c0_3 = arith.constant 0 : index
    %c0_4 = arith.constant 0 : index
    %4 = vector.load %arg2[%c0_2, %c0_3, %c0_4] : memref<2x4x384xf32, #tpu.memory_space<vmem>>, vector<2x4x384xf32>
    %cst = arith.constant dense<0.000000e+00> : vector<2x4xf32>
    %5 = vector.multi_reduction <add>, %4, %cst [2] : vector<2x4x384xf32> to vector<2x4xf32>
    %6 = arith.addf %3, %5 : vector<2x4xf32>
    %c0_5 = arith.constant 0 : index
    %c0_6 = arith.constant 0 : index
    %7 = vector.load %arg6[%c0_5, %c0_6] : memref<2x4xf32, #tpu.memory_space<vmem>>, vector<2x4xf32>
    tpu.vector_store %arg6[%c0_5, %c0_6], %6 {strides = array<i32>} : memref<2x4xf32, #tpu.memory_space<vmem>>, vector<2x4xf32>,
    %c5_i32 = arith.constant 5 : i32
    %8 = arith.cmpi eq, %arg1, %c5_i32 : i32
    %9 = arith.extui %8 : i1 to i32
    %c0_i32_7 = arith.constant 0 : i32
    %10 = arith.cmpi ne, %9, %c0_i32_7 : i32
    scf.if %10 {
      %c0_8 = arith.constant 0 : index
      %c0_9 = arith.constant 0 : index
      %11 = vector.load %arg6[%c0_8, %c0_9] : memref<2x4xf32, #tpu.memory_space<vmem>>, vector<2x4xf32>
      %cst_10 = arith.constant 4.34027781E-4 : f32
      %12 = vector.broadcast %cst_10 : f32 to vector<2x4xf32>
      %13 = arith.mulf %11, %12 : vector<2x4xf32>
      %c0_11 = arith.constant 0 : index
      %c0_12 = arith.constant 0 : index
      %14 = vector.load %arg3[%c0_11, %c0_12] : memref<4x128xf32, #tpu.memory_space<vmem>>, vector<4x128xf32>
      %cst_13 = arith.constant dense<0.000000e+00> : vector<2x128xf32>
      %15 = tpu.matmul %13, %14, %cst_13 {dimension_numbers = #tpu.dot_dimension_numbers<[1], [0], [0], [1], [0, 0, 1, 1], [], []>} : vector<2x4xf32>, vector<4x128xf32>, vector<2x128xf32> -> vector<2x128xf32>
      %c0_14 = arith.constant 0 : index
      %c0_15 = arith.constant 0 : index
      %16 = vector.load %arg4[%c0_14, %c0_15] : memref<1x128xf32, #tpu.memory_space<vmem>>, vector<1x128xf32>
      %17 = vector.broadcast %16 : vector<1x128xf32> to vector<2x128xf32>
      %18 = arith.addf %15, %17 : vector<2x128xf32>
      %c0_16 = arith.constant 0 : index
      %c0_17 = arith.constant 0 : index
      %19 = vector.load %arg5[%c0_16, %c0_17] : memref<2x128xf32, #tpu.memory_space<vmem>>, vector<2x128xf32>
      tpu.vector_store %arg5[%c0_16, %c0_17], %18 {strides = array<i32>} : memref<2x128xf32, #tpu.memory_space<vmem>>, vector<2x128xf32>,
    } else {
    }
    return
  }
  func.func @transform_0(%arg0: i32, %arg1: i32) -> (i32, i32, i32) {
    %c0_i32 = arith.constant 0 : i32
    %c0_i32_0 = arith.constant 0 : i32
    return %arg0, %c0_i32, %arg1 : i32, i32, i32
  }
  func.func @transform_1(%arg0: i32, %arg1: i32) -> (i32, i32) {
    %c0_i32 = arith.constant 0 : i32
    %c0_i32_0 = arith.constant 0 : i32
    %c0_i32_1 = arith.constant 0 : i32
    return %c0_i32, %c0_i32_0 : i32, i32
  }
  func.func @transform_2(%arg0: i32, %arg1: i32) -> (i32, i32) {
    %c0_i32 = arith.constant 0 : i32
    %c0_i32_0 = arith.constant 0 : i32
    %c0_i32_1 = arith.constant 0 : i32
    return %c0_i32, %c0_i32_0 : i32, i32
  }
  func.func @transform_3(%arg0: i32, %arg1: i32) -> (i32, i32) {
    %c0_i32 = arith.constant 0 : i32
    %c0_i32_0 = arith.constant 0 : i32
    return %arg0, %c0_i32 : i32, i32
  }
}

module attributes {stable_mosaic.version = 11 : i64} {
  func.func @_spatial_chunk_kernel(%arg0: i32, %arg1: i32, %arg2: memref<2x4x384xf32, #tpu.memory_space<vmem>>, %arg3: memref<4x128xf32, #tpu.memory_space<vmem>>, %arg4: memref<1x128xf32, #tpu.memory_space<vmem>>, %arg5: memref<2x128xf32, #tpu.memory_space<vmem>>, %arg6: memref<2x4xf32, #tpu.memory_space<vmem>>) attributes {dimension_semantics = [#tpu.dimension_semantics<parallel>, #tpu.dimension_semantics<arbitrary>], iteration_bounds = array<i64: 1, 6>, scalar_prefetch = 0 : i64, scratch_operands = 1 : i64, tpu.core_type = #tpu.core_type<tc>, window_params = [{transform_indices = @transform_0, window_bounds = array<i64: 2, 4, 384>}, {pipeline_mode = #tpu.pipeline_mode<synchronous>, transform_indices = @transform_1, window_bounds = array<i64: 4, 128>}, {pipeline_mode = #tpu.pipeline_mode<synchronous>, transform_indices = @transform_2, window_bounds = array<i64: 1, 128>}, {transform_indices = @transform_3, window_bounds = array<i64: 2, 128>}]} {
    %c0_i32 = arith.constant 0 : i32
    %0 = arith.cmpi eq, %arg1, %c0_i32 : i32
    %1 = arith.extui %0 : i1 to i32
    %c0_i32_0 = arith.constant 0 : i32
    %2 = arith.cmpi ne, %1, %c0_i32_0 : i32
    scf.if %2 {
      %cst_8 = arith.constant 0.000000e+00 : f32
      %11 = vector.broadcast %cst_8 : f32 to vector<2x4xf32>
      %c0_9 = arith.constant 0 : index
      %c0_10 = arith.constant 0 : index
      %12 = vector.load %arg6[%c0_9, %c0_10] : memref<2x4xf32, #tpu.memory_space<vmem>>, vector<2x4xf32>
      tpu.vector_store %arg6[%c0_9, %c0_10], %11 {strides = array<i32>} : memref<2x4xf32, #tpu.memory_space<vmem>>, vector<2x4xf32>,
    } else {
    }
    %c0 = arith.constant 0 : index
    %c0_1 = arith.constant 0 : index
    %3 = vector.load %arg6[%c0, %c0_1] : memref<2x4xf32, #tpu.memory_space<vmem>>, vector<2x4xf32>
    %c0_2 = arith.constant 0 : index
    %c0_3 = arith.constant 0 : index
    %c0_4 = arith.constant 0 : index
    %4 = vector.load %arg2[%c0_2, %c0_3, %c0_4] : memref<2x4x384xf32, #tpu.memory_space<vmem>>, vector<2x4x384xf32>
    %cst = arith.constant dense<0.000000e+00> : vector<2x4xf32>
    %5 = vector.multi_reduction <add>, %4, %cst [2] : vector<2x4x384xf32> to vector<2x4xf32>
    %6 = arith.addf %3, %5 : vector<2x4xf32>
    %c0_5 = arith.constant 0 : index
    %c0_6 = arith.constant 0 : index
    %7 = vector.load %arg6[%c0_5, %c0_6] : memref<2x4xf32, #tpu.memory_space<vmem>>, vector<2x4xf32>
    tpu.vector_store %arg6[%c0_5, %c0_6], %6 {strides = array<i32>} : memref<2x4xf32, #tpu.memory_space<vmem>>, vector<2x4xf32>,
    %c5_i32 = arith.constant 5 : i32
    %8 = arith.cmpi eq, %arg1, %c5_i32 : i32
    %9 = arith.extui %8 : i1 to i32
    %c0_i32_7 = arith.constant 0 : i32
    %10 = arith.cmpi ne, %9, %c0_i32_7 : i32
    scf.if %10 {
      %c0_8 = arith.constant 0 : index
      %c0_9 = arith.constant 0 : index
      %11 = vector.load %arg6[%c0_8, %c0_9] : memref<2x4xf32, #tpu.memory_space<vmem>>, vector<2x4xf32>
      %cst_10 = arith.constant 4.34027781E-4 : f32
      %12 = vector.broadcast %cst_10 : f32 to vector<2x4xf32>
      %13 = arith.mulf %11, %12 : vector<2x4xf32>
      %c0_11 = arith.constant 0 : index
      %c0_12 = arith.constant 0 : index
      %14 = vector.load %arg3[%c0_11, %c0_12] : memref<4x128xf32, #tpu.memory_space<vmem>>, vector<4x128xf32>
      %cst_13 = arith.constant dense<0.000000e+00> : vector<2x128xf32>
      %15 = tpu.matmul %13, %14, %cst_13 {dimension_numbers = #tpu.dot_dimension_numbers<[1], [0], [0], [1], [0, 0, 1, 1], [], []>} : vector<2x4xf32>, vector<4x128xf32>, vector<2x128xf32> -> vector<2x128xf32>
      %c0_14 = arith.constant 0 : index
      %c0_15 = arith.constant 0 : index
      %16 = vector.load %arg4[%c0_14, %c0_15] : memref<1x128xf32, #tpu.memory_space<vmem>>, vector<1x128xf32>
      %17 = vector.broadcast %16 : vector<1x128xf32> to vector<2x128xf32>
      %18 = arith.addf %15, %17 : vector<2x128xf32>
      %c0_16 = arith.constant 0 : index
      %c0_17 = arith.constant 0 : index
      %19 = vector.load %arg5[%c0_16, %c0_17] : memref<2x128xf32, #tpu.memory_space<vmem>>, vector<2x128xf32>
      tpu.vector_store %arg5[%c0_16, %c0_17], %18 {strides = array<i32>} : memref<2x128xf32, #tpu.memory_space<vmem>>, vector<2x128xf32>,
    } else {
    }
    return
  }
  func.func @transform_0(%arg0: i32, %arg1: i32) -> (i32, i32, i32) {
    %c0_i32 = arith.constant 0 : i32
    %c0_i32_0 = arith.constant 0 : i32
    return %arg0, %c0_i32, %arg1 : i32, i32, i32
  }
  func.func @transform_1(%arg0: i32, %arg1: i32) -> (i32, i32) {
    %c0_i32 = arith.constant 0 : i32
    %c0_i32_0 = arith.constant 0 : i32
    %c0_i32_1 = arith.constant 0 : i32
    return %c0_i32, %c0_i32_0 : i32, i32
  }
  func.func @transform_2(%arg0: i32, %arg1: i32) -> (i32, i32) {
    %c0_i32 = arith.constant 0 : i32
    %c0_i32_0 = arith.constant 0 : i32
    %c0_i32_1 = arith.constant 0 : i32
    return %c0_i32, %c0_i32_0 : i32, i32
  }
  func.func @transform_3(%arg0: i32, %arg1: i32) -> (i32, i32) {
    %c0_i32 = arith.constant 0 : i32
    %c0_i32_0 = arith.constant 0 : i32
    return %arg0, %c0_i32 : i32, i32
  }
}

</mosaic_0001>

<bundles_post_ra>
// kernel: tpu_custom_call.1
= control target key start
LH: loop header
LB: loop body
LE: loop exit
PB: predicated region body
PF: predicated region fallthrough
CT: control target
= control target key end

     0   :  { %8 = vsyncpa [#allocation4], 0  ;;  %s806_s0 = inlined_call_operand.hbm [shape: f32[2,4,2304], index: 0, kind: input, shape index: {}]   ;;  %s807_s1 = inlined_call_operand.hbm [shape: f32[4,128], index: 1, kind: input, shape index: {}]   ;;  %s808_s2 = inlined_call_operand.vmem [shape: f32[1,128], index: 2, kind: input, shape index: {}]   ;;  %s809_s3 = inlined_call_operand.hbm [shape: f32[2,128], index: 3, kind: output, shape index: {}]  }
   0x1   :  { %10 = vsyncpa [#allocation4 + $0x1], 0 }
   0x2   :  { %11 = vsyncpa [#allocation7], 0 }
   0x3   :  { %12 = vsyncpa [#allocation5], 0  ;;  %s673_s12 = smov 0   ;;  %s675_s13 = smov 0  }
   0x4   :  { %s677_s14 = smov 0   ;;  %s679_s15 = smov 0  }
   0x5   :  { %s681_s16 = smov 0   ;;  %s683_s17 = smov 0  }
   0x6 LB: > { %s403_s18 = sadd.s32 4294967295, %s645_s17   ;;  %s39_s19 = sadd.s32 1, %s633_s14  ;;  %s645_s17 = sphi %s683_s17, %s18_s17   ;;  %s641_s16 = sphi %s681_s16, %s819_s16   ;;  %s637_s15 = sphi %s679_s15, %s818_s15   ;;  %s633_s14 = sphi %s677_s14, %s817_s14   ;;  %s629_s13 = sphi %s675_s13, %s816_s13   ;;  %s625_s12 = sphi %s673_s12, %s815_s12  }
   0x7   : > { %p46_p0 = scmp.ne.s32.totalorder %s633_s14, %s629_s13  ;;  %p47_p1 = scmp.eq.s32.totalorder %s645_s17, 0 }
   0x8   : > { %p52_p2 = scmp.ne.s32.totalorder %s629_s13, %s625_s12  ;;  %p709_p3 = scmp.eq.s32.totalorder %s403_s18, 0 }
   0x9   : > { %p713_p4 = por %p47_p1, %p46_p0  ;;  %p404_p5 = scmp.ge.s32.totalorder %s645_s17, 1 }
   0xa   : > { %p720_p6 = por %p709_p3, %p52_p2  ;;  %p131_p7 = scmp.lt.s32.totalorder %s645_s17, 7 }
   0xb   : > { %s143_s25 = sshll.u32 %s807_s1, 4  ;;  %s647_s27 = smov [#allocation6]   ;;  %s144_s25 = int_to_ptr.hbm [resolvable:$true] %s143_s25 }
   0xc   : > { %p728_p8 = pnand %p404_p5, %p131_p7  ;;  %s145_s28 = sshll.u32 %s647_s27, 4  ;;  %s146_s28 = int_to_ptr.vmem [resolvable:$true] %s145_s28 }
   0xd   : > { %p440_p10 = scmp.lt.s32.totalorder %s645_s17, 6  ;;  %s27_s30 = sadd.s32 1, %s641_s16 }
   0xe   : > { %p431_p9 = pneg %p728_p8  ;;  %p28_p13 = scmp.ge.s32.totalorder %s27_s30, 6 }
   0xf   : > { %p739_p12 = pnand %p440_p10, %p713_p4  ;;  %s159_s4 = sand.u32 1, %s633_s14  }
  0x10   : > { %p432_p11 = pnand %p431_p9, %p709_p3  ;;  %s418_s5 = smul.u32 12, %s641_s16 }
  0x11   : > { %s821_s30 = smov (%p28_p13, %s27_s30), 0  ;;  %s419_s6 = smul.u32 24, %s159_s4 }
  0x12   : > { %434 = dma.hbm_to_vmem [thread:$0]  (!%p432_p11), %s144_s25, 64, %s146_s28, [#allocation7]  }
  0x13   : > { %s35_s7 = ssub.s32 %s641_s16, %s821_s30  ;;  %s171_s10 = scalar_lea.hbm %s806_s0, %s418_s5 }
  0x14   : > { %p37_p0 = scmp.eq.s32.totalorder %s35_s7, 0  ;;  %s172_s11 = sshll.u32 %s171_s10, 4  ;;  %s173_s11 = int_to_ptr.hbm [resolvable:$true] %s172_s11 }
  0x15   : > { %s163_s12 = scalar_lea.vmem [#allocation3], %s419_s6  ;;  %s160_s24 = scalar_lea.sflag [#allocation4], %s159_s4 }
  0x16   : > { %s174_s21 = sshll.u32 %s163_s12, 4  ;;  %s648_s25 = smov 1152   ;;  %s175_s21 = int_to_ptr.vmem [resolvable:$true] %s174_s21 }
  0x17   : > { %s756_s23 = scalar_select %p37_p0, %s633_s14, %s39_s19  }
  0x18   : > { %s649_s27 = smov 192   ;;  %s650_s28 = smov 12  }
  0x19   : > { %438 = dma.hbm_to_vmem [thread:$0]  (!%p739_p12), %s173_s11, 384, %s175_s21, %s160_s24, %s648_s25, %s649_s27, %s650_s28  }
  0x1a   : > { %186 = sbr.rel (%p728_p8) target bundleno = 331 (0x14b), region = 32  ;;  %s188_s5 = sand.u32 (!%p728_p8), 1, %s629_s13  }
  0x1b   : > { %s420_s7 = smul.u32 (!%p728_p8), 24, %s188_s5  ;;  %s189_s6 = scalar_lea.sflag (!%p728_p8), [#allocation4], %s188_s5 }
  0x1d   : > { %s192_s8 = scalar_lea.vmem (!%p728_p8), [#allocation3], %s420_s7 }
  0x1f   : > { %612 = dma.done.wait (%p720_p6), %s189_s6, 384  }
  0x20   : > { %614 = vsyncadd (%p720_p6), %s189_s6, 4294966912 }
  0x21   : > { %616 = dma.done.wait (%p709_p3), [#allocation7], 64  }
  0x22   : > { %618 = vsyncadd (%p709_p3), [#allocation7], 4294967232  ;;  %p410_p1 = scmp.ne.s32.totalorder %s637_s15, 0 }
  0x24   : > { %221 = sbr.rel (%p410_p1) target bundleno = 43 (0x2b), region = 44 }
  0x29   : > { %vm222_vm0 = vcmask 25600   ;;  %v651_v0 = vmov 0.0  }
  0x2a   : > { %223 = vst.msk [vmem:[#allocation2] sm:$0x3] %vm222_vm0, %v651_v0 }
  0x2b PF: > { %v225_v1 = vld [vmem:[%s192_s8] sm:$0xff]  ;;  %v226_v2 = vld [vmem:[%s192_s8 + $0x8] sm:$0xf]  ;;  %v227_v3 = vld [vmem:[%s192_s8 + $0xc] sm:$0xff]  ;;  %vm252_vm1 = vcmask 1043456   ;;  %v269_v22 = vlaneseq  ;;  %vm273_vm2 = vcmask 1041409  }
  0x2c   : > { %233 = vst [vmem:[#allocation1] ss:$2 sm:$0xff] %v225_v1  ;;  %v228_v4 = vld [vmem:[%s192_s8 + $0x14] sm:$0xf]  ;;  %vm277_vm3 = vcmask 25600   ;;  %p411_p2 = scmp.ne.s32.totalorder %s637_s15, 5 }
  0x2d   : > { %235 = vst [vmem:[#allocation1 + $0x10] ss:$2 sm:$0xff] %v226_v2  ;;  %v270_v23 = vand.u32 127, %v269_v22 }
  0x2e   : > { %240 = vst [vmem:[#allocation1 + $0x20] ss:$2 sm:$0xff] %v227_v3 }
  0x2f   : > { %242 = vst [vmem:[#allocation1 + $0x30] ss:$2 sm:$0xff] %v228_v4 }
  0x31   : > { %v224_v26 = vld [vmem:[#allocation2] sm:$0x3] }
  0x33   : > { %v236_v5 = vld.sshfl [vmem:[#allocation1] sm:$0xff pattern:$0x75316420]  ;;  %v237_v6 = vld.sshfl [vmem:[#allocation1 + $0x8] sm:$0xff pattern:$0x75316420] }
  0x34   : > { %v238_v7 = vld.sshfl [vmem:[#allocation1 + $0x10] sm:$0xff pattern:$0x75316420]  ;;  %v253_v8 = vsel %vm252_vm1, %v236_v5, 0.0  ;;  %v254_v9 = vsel %vm252_vm1, %v237_v6, 0.0 }
  0x35   : > { %v255_v10 = vadd.f32 %v254_v9, %v253_v8  ;;  %v256_v11 = vsel %vm252_vm1, %v238_v7, 0.0  ;;  %v243_v12 = vld.sshfl [vmem:[#allocation1 + $0x20] sm:$0xff pattern:$0x75316420] }
  0x36   : > { %v244_v13 = vld.sshfl [vmem:[#allocation1 + $0x28] sm:$0xff pattern:$0x75316420]  ;;  %v245_v15 = vld.sshfl [vmem:[#allocation1 + $0x30] sm:$0xff pattern:$0x75316420] }
  0x37   : > { %v257_v14 = vadd.f32 %v256_v11, %v255_v10  ;;  %v260_v16 = vsel %vm252_vm1, %v243_v12, 0.0  ;;  %v261_v17 = vsel %vm252_vm1, %v244_v13, 0.0  ;;  %v263_v19 = vsel %vm252_vm1, %v245_v15, 0.0 }
  0x38   : > { %v262_v18 = vadd.f32 %v261_v17, %v260_v16 }
  0x39   : > { %258 = vadd.xlane.f32.xlu0 %v257_v14 }
  0x3a   : > { %v264_v20 = vadd.f32 %v263_v19, %v262_v18 }
  0x41   : > { %265 = vadd.xlane.f32.xlu0 %v264_v20 }
  0xac   : > { %v259_v21 = vpop.xlane.xlu0 %258 }
  0xad   : > { %v271_v25 = vperm.slane %v259_v21, %v270_v23 }
  0xb4   : > { %v266_v24 = vpop.xlane.xlu0 %265 }
  0xb5   : > { %v272_v27 = vperm.slane %v266_v24, %v270_v23 }
  0xb6   : > { %282 = sbr.rel (%p411_p2) target bundleno = 325 (0x145), region = 48 }
  0xb7   : > { %v274_v28 = vsel %vm273_vm2, %v272_v27, %v271_v25 }
  0xb8   : > { %v276_v29 = vadd.f32 %v274_v28, %v224_v26 }
  0xba   : > { %278 = vst.msk [vmem:[#allocation2] sm:$0x3] %vm277_vm3, %v276_v29 }
  0xbb   : > { %v285_v30 = vld [vmem:[#allocation6] sm:$0xf]  ;;  %vm290_vm4 = vcmask 31744   ;;  %v498_v33 = vld [vmem:[%s808_s2] ss:$0 sm:$0xff] }
  0xbc   : > { %412 = vmatpush.msk.msra.mxu0 %vm252_vm1, %v285_v30 }
  0xc1   : > { %v283_v31 = vld [vmem:[#allocation2] sm:$0x3] }
  0xc2   : > { %v284_v32 = vmul.f32 0.00043402778, %v283_v31 }
  0xc4   : > { %413 = vmatmul.msk.f32.vlgmr.msra.gmra.mxu0 %vm290_vm4, %v284_v32 }
 0x141   : > { %v314_v34 = vpop.f32.mrf.mxu0 }
 0x142   : > { %v315_v35 = vadd.f32 %v498_v33, %v314_v34 }
 0x144   : > { %317 = vst [vmem:[#allocation8] sm:$0x3] %v315_v35 }
 0x145 PF: > { %p442_p3 = scmp.eq.s32.totalorder %s403_s18, 5  ;;  %s328_s26 = sshll.u32 %s809_s3, 4  ;;  %s329_s26 = int_to_ptr.hbm [resolvable:$true] %s328_s26 }
 0x146   : > { %s652_s29 = smov [#allocation8]  }
 0x147   : > { %s326_s4 = sshll.u32 %s652_s29, 4  ;;  %s327_s4 = int_to_ptr.vmem [resolvable:$true] %s326_s4 }
 0x148   : > { %428 = dma.vmem_to_hbm [thread:$0]  (%p442_p3), %s327_s4, 32, %s329_s26, [#allocation5]  }
 0x149   : > { %620 = dma.done.wait (%p442_p3), [#allocation5], 32  }
 0x14a   : > { %622 = vsyncadd (%p442_p3), [#allocation5], 4294967264 }
 0x14b PF: > { %s18_s17 = sadd.s32 1, %s645_s17   ;;  %s815_s12 = smov %s629_s13 }
 0x14c   : > { %p15_p4 = scmp.ge.s32.totalorder %s18_s17, 8   ;;  %s816_s13 = smov %s633_s14 }
 0x14d   : > { %s817_s14 = smov %s756_s23  ;;  %s818_s15 = smov %s641_s16 }
 0x14e   : > { %s819_s16 = smov %s821_s30  ;;  %17 = sbr.rel (!%p15_p4) target bundleno = 6 (0x6), region = 85 }
 0x153   :  { %342 = vsyncpa [#allocation4], 1 }
 0x154   :  { %344 = vsyncpa [#allocation4 + $0x1], 1 }
 0x155   :  { %345 = vsyncpa [#allocation7], 1 }
 0x156   :  { %346 = vsyncpa [#allocation5], 1 }
 0x157   :  { %348 = vsyncpa [#allocation5 + $0x1], 1 }

// kernel: tpu_custom_call.1
= control target key start
LH: loop header
LB: loop body
LE: loop exit
PB: predicated region body
PF: predicated region fallthrough
CT: control target
= control target key end

     0   :  { %8 = vsyncpa [#allocation4], 0  ;;  %s806_s0 = inlined_call_operand.hbm [shape: f32[2,4,2304], index: 0, kind: input, shape index: {}]   ;;  %s807_s1 = inlined_call_operand.hbm [shape: f32[4,128], index: 1, kind: input, shape index: {}]   ;;  %s808_s2 = inlined_call_operand.vmem [shape: f32[1,128], index: 2, kind: input, shape index: {}]   ;;  %s809_s3 = inlined_call_operand.hbm [shape: f32[2,128], index: 3, kind: output, shape index: {}]  }
   0x1   :  { %10 = vsyncpa [#allocation4 + $0x1], 0 }
   0x2   :  { %11 = vsyncpa [#allocation7], 0 }
   0x3   :  { %12 = vsyncpa [#allocation5], 0  ;;  %s673_s12 = smov 0   ;;  %s675_s13 = smov 0  }
   0x4   :  { %s677_s14 = smov 0   ;;  %s679_s15 = smov 0  }
   0x5   :  { %s681_s16 = smov 0   ;;  %s683_s17 = smov 0  }
   0x6 LB: > { %s403_s18 = sadd.s32 4294967295, %s645_s17   ;;  %s39_s19 = sadd.s32 1, %s633_s14  ;;  %s645_s17 = sphi %s683_s17, %s18_s17   ;;  %s641_s16 = sphi %s681_s16, %s819_s16   ;;  %s637_s15 = sphi %s679_s15, %s818_s15   ;;  %s633_s14 = sphi %s677_s14, %s817_s14   ;;  %s629_s13 = sphi %s675_s13, %s816_s13   ;;  %s625_s12 = sphi %s673_s12, %s815_s12  }
   0x7   : > { %p46_p0 = scmp.ne.s32.totalorder %s633_s14, %s629_s13  ;;  %p47_p1 = scmp.eq.s32.totalorder %s645_s17, 0 }
   0x8   : > { %p52_p2 = scmp.ne.s32.totalorder %s629_s13, %s625_s12  ;;  %p709_p3 = scmp.eq.s32.totalorder %s403_s18, 0 }
   0x9   : > { %p713_p4 = por %p47_p1, %p46_p0  ;;  %p404_p5 = scmp.ge.s32.totalorder %s645_s17, 1 }
   0xa   : > { %p720_p6 = por %p709_p3, %p52_p2  ;;  %p131_p7 = scmp.lt.s32.totalorder %s645_s17, 7 }
   0xb   : > { %s143_s25 = sshll.u32 %s807_s1, 4  ;;  %s647_s27 = smov [#allocation6]   ;;  %s144_s25 = int_to_ptr.hbm [resolvable:$true] %s143_s25 }
   0xc   : > { %p728_p8 = pnand %p404_p5, %p131_p7  ;;  %s145_s28 = sshll.u32 %s647_s27, 4  ;;  %s146_s28 = int_to_ptr.vmem [resolvable:$true] %s145_s28 }
   0xd   : > { %p440_p10 = scmp.lt.s32.totalorder %s645_s17, 6  ;;  %s27_s30 = sadd.s32 1, %s641_s16 }
   0xe   : > { %p431_p9 = pneg %p728_p8  ;;  %p28_p13 = scmp.ge.s32.totalorder %s27_s30, 6 }
   0xf   : > { %p739_p12 = pnand %p440_p10, %p713_p4  ;;  %s159_s4 = sand.u32 1, %s633_s14  }
  0x10   : > { %p432_p11 = pnand %p431_p9, %p709_p3  ;;  %s418_s5 = smul.u32 12, %s641_s16 }
  0x11   : > { %s821_s30 = smov (%p28_p13, %s27_s30), 0  ;;  %s419_s6 = smul.u32 24, %s159_s4 }
  0x12   : > { %434 = dma.hbm_to_vmem [thread:$0]  (!%p432_p11), %s144_s25, 64, %s146_s28, [#allocation7]  }
  0x13   : > { %s35_s7 = ssub.s32 %s641_s16, %s821_s30  ;;  %s171_s10 = scalar_lea.hbm %s806_s0, %s418_s5 }
  0x14   : > { %p37_p0 = scmp.eq.s32.totalorder %s35_s7, 0  ;;  %s172_s11 = sshll.u32 %s171_s10, 4  ;;  %s173_s11 = int_to_ptr.hbm [resolvable:$true] %s172_s11 }
  0x15   : > { %s163_s12 = scalar_lea.vmem [#allocation3], %s419_s6  ;;  %s160_s24 = scalar_lea.sflag [#allocation4], %s159_s4 }
  0x16   : > { %s174_s21 = sshll.u32 %s163_s12, 4  ;;  %s648_s25 = smov 1152   ;;  %s175_s21 = int_to_ptr.vmem [resolvable:$true] %s174_s21 }
  0x17   : > { %s756_s23 = scalar_select %p37_p0, %s633_s14, %s39_s19  }
  0x18   : > { %s649_s27 = smov 192   ;;  %s650_s28 = smov 12  }
  0x19   : > { %438 = dma.hbm_to_vmem [thread:$0]  (!%p739_p12), %s173_s11, 384, %s175_s21, %s160_s24, %s648_s25, %s649_s27, %s650_s28  }
  0x1a   : > { %186 = sbr.rel (%p728_p8) target bundleno = 331 (0x14b), region = 32  ;;  %s188_s5 = sand.u32 (!%p728_p8), 1, %s629_s13  }
  0x1b   : > { %s420_s7 = smul.u32 (!%p728_p8), 24, %s188_s5  ;;  %s189_s6 = scalar_lea.sflag (!%p728_p8), [#allocation4], %s188_s5 }
  0x1d   : > { %s192_s8 = scalar_lea.vmem (!%p728_p8), [#allocation3], %s420_s7 }
  0x1f   : > { %612 = dma.done.wait (%p720_p6), %s189_s6, 384  }
  0x20   : > { %614 = vsyncadd (%p720_p6), %s189_s6, 4294966912 }
  0x21   : > { %616 = dma.done.wait (%p709_p3), [#allocation7], 64  }
  0x22   : > { %618 = vsyncadd (%p709_p3), [#allocation7], 4294967232  ;;  %p410_p1 = scmp.ne.s32.totalorder %s637_s15, 0 }
  0x24   : > { %221 = sbr.rel (%p410_p1) target bundleno = 43 (0x2b), region = 44 }
  0x29   : > { %vm222_vm0 = vcmask 25600   ;;  %v651_v0 = vmov 0.0  }
  0x2a   : > { %223 = vst.msk [vmem:[#allocation2] sm:$0x3] %vm222_vm0, %v651_v0 }
  0x2b PF: > { %v225_v1 = vld [vmem:[%s192_s8] sm:$0xff]  ;;  %v226_v2 = vld [vmem:[%s192_s8 + $0x8] sm:$0xf]  ;;  %v227_v3 = vld [vmem:[%s192_s8 + $0xc] sm:$0xff]  ;;  %vm252_vm1 = vcmask 1043456   ;;  %v269_v22 = vlaneseq  ;;  %vm273_vm2 = vcmask 1041409  }
  0x2c   : > { %233 = vst [vmem:[#allocation1] ss:$2 sm:$0xff] %v225_v1  ;;  %v228_v4 = vld [vmem:[%s192_s8 + $0x14] sm:$0xf]  ;;  %vm277_vm3 = vcmask 25600   ;;  %p411_p2 = scmp.ne.s32.totalorder %s637_s15, 5 }
  0x2d   : > { %235 = vst [vmem:[#allocation1 + $0x10] ss:$2 sm:$0xff] %v226_v2  ;;  %v270_v23 = vand.u32 127, %v269_v22 }
  0x2e   : > { %240 = vst [vmem:[#allocation1 + $0x20] ss:$2 sm:$0xff] %v227_v3 }
  0x2f   : > { %242 = vst [vmem:[#allocation1 + $0x30] ss:$2 sm:$0xff] %v228_v4 }
  0x31   : > { %v224_v26 = vld [vmem:[#allocation2] sm:$0x3] }
  0x33   : > { %v236_v5 = vld.sshfl [vmem:[#allocation1] sm:$0xff pattern:$0x75316420]  ;;  %v237_v6 = vld.sshfl [vmem:[#allocation1 + $0x8] sm:$0xff pattern:$0x75316420] }
  0x34   : > { %v238_v7 = vld.sshfl [vmem:[#allocation1 + $0x10] sm:$0xff pattern:$0x75316420]  ;;  %v253_v8 = vsel %vm252_vm1, %v236_v5, 0.0  ;;  %v254_v9 = vsel %vm252_vm1, %v237_v6, 0.0 }
  0x35   : > { %v255_v10 = vadd.f32 %v254_v9, %v253_v8  ;;  %v256_v11 = vsel %vm252_vm1, %v238_v7, 0.0  ;;  %v243_v12 = vld.sshfl [vmem:[#allocation1 + $0x20] sm:$0xff pattern:$0x75316420] }
  0x36   : > { %v244_v13 = vld.sshfl [vmem:[#allocation1 + $0x28] sm:$0xff pattern:$0x75316420]  ;;  %v245_v15 = vld.sshfl [vmem:[#allocation1 + $0x30] sm:$0xff pattern:$0x75316420] }
  0x37   : > { %v257_v14 = vadd.f32 %v256_v11, %v255_v10  ;;  %v260_v16 = vsel %vm252_vm1, %v243_v12, 0.0  ;;  %v261_v17 = vsel %vm252_vm1, %v244_v13, 0.0  ;;  %v263_v19 = vsel %vm252_vm1, %v245_v15, 0.0 }
  0x38   : > { %v262_v18 = vadd.f32 %v261_v17, %v260_v16 }
  0x39   : > { %258 = vadd.xlane.f32.xlu0 %v257_v14 }
  0x3a   : > { %v264_v20 = vadd.f32 %v263_v19, %v262_v18 }
  0x41   : > { %265 = vadd.xlane.f32.xlu0 %v264_v20 }
  0xac   : > { %v259_v21 = vpop.xlane.xlu0 %258 }
  0xad   : > { %v271_v25 = vperm.slane %v259_v21, %v270_v23 }
  0xb4   : > { %v266_v24 = vpop.xlane.xlu0 %265 }
  0xb5   : > { %v272_v27 = vperm.slane %v266_v24, %v270_v23 }
  0xb6   : > { %282 = sbr.rel (%p411_p2) target bundleno = 325 (0x145), region = 48 }
  0xb7   : > { %v274_v28 = vsel %vm273_vm2, %v272_v27, %v271_v25 }
  0xb8   : > { %v276_v29 = vadd.f32 %v274_v28, %v224_v26 }
  0xba   : > { %278 = vst.msk [vmem:[#allocation2] sm:$0x3] %vm277_vm3, %v276_v29 }
  0xbb   : > { %v285_v30 = vld [vmem:[#allocation6] sm:$0xf]  ;;  %vm290_vm4 = vcmask 31744   ;;  %v498_v33 = vld [vmem:[%s808_s2] ss:$0 sm:$0xff] }
  0xbc   : > { %412 = vmatpush.msk.msra.mxu0 %vm252_vm1, %v285_v30 }
  0xc1   : > { %v283_v31 = vld [vmem:[#allocation2] sm:$0x3] }
  0xc2   : > { %v284_v32 = vmul.f32 0.00043402778, %v283_v31 }
  0xc4   : > { %413 = vmatmul.msk.f32.vlgmr.msra.gmra.mxu0 %vm290_vm4, %v284_v32 }
 0x141   : > { %v314_v34 = vpop.f32.mrf.mxu0 }
 0x142   : > { %v315_v35 = vadd.f32 %v498_v33, %v314_v34 }
 0x144   : > { %317 = vst [vmem:[#allocation8] sm:$0x3] %v315_v35 }
 0x145 PF: > { %p442_p3 = scmp.eq.s32.totalorder %s403_s18, 5  ;;  %s328_s26 = sshll.u32 %s809_s3, 4  ;;  %s329_s26 = int_to_ptr.hbm [resolvable:$true] %s328_s26 }
 0x146   : > { %s652_s29 = smov [#allocation8]  }
 0x147   : > { %s326_s4 = sshll.u32 %s652_s29, 4  ;;  %s327_s4 = int_to_ptr.vmem [resolvable:$true] %s326_s4 }
 0x148   : > { %428 = dma.vmem_to_hbm [thread:$0]  (%p442_p3), %s327_s4, 32, %s329_s26, [#allocation5]  }
 0x149   : > { %620 = dma.done.wait (%p442_p3), [#allocation5], 32  }
 0x14a   : > { %622 = vsyncadd (%p442_p3), [#allocation5], 4294967264 }
 0x14b PF: > { %s18_s17 = sadd.s32 1, %s645_s17   ;;  %s815_s12 = smov %s629_s13 }
 0x14c   : > { %p15_p4 = scmp.ge.s32.totalorder %s18_s17, 8   ;;  %s816_s13 = smov %s633_s14 }
 0x14d   : > { %s817_s14 = smov %s756_s23  ;;  %s818_s15 = smov %s641_s16 }
 0x14e   : > { %s819_s16 = smov %s821_s30  ;;  %17 = sbr.rel (!%p15_p4) target bundleno = 6 (0x6), region = 85 }
 0x153   :  { %342 = vsyncpa [#allocation4], 1 }
 0x154   :  { %344 = vsyncpa [#allocation4 + $0x1], 1 }
 0x155   :  { %345 = vsyncpa [#allocation7], 1 }
 0x156   :  { %346 = vsyncpa [#allocation5], 1 }
 0x157   :  { %348 = vsyncpa [#allocation5 + $0x1], 1 }

</bundles_post_ra>
